<compile_context>
chip_gen: v6e
topology: v6e:2x2x1
jax: 0.10.0
libtpu: 0.0.40
codegen_flags: <defaults>
</compile_context>

<pallas_src>
import functools
import math

import jax
import jax.numpy as jnp
from jax.experimental import pallas as pl
from jax.experimental.pallas import tpu as pltpu


# ------------------------------ kernel ---------------------------------------

def edgecnn_kernel(x_ref, w1_ref, b1_ref, w2_ref, b2_ref, o_ref, *, compute_dtype):
    # x_ref : (T, FOLD*C_in)           folded edge tile, native HBM dtype
    # w1_ref: (FOLD*C_in,  FOLD*C_out) block-diagonal conv1 weight (compute_dtype)
    # b1_ref: (1, FOLD*C_out) f32
    # w2_ref: (FOLD*C_out, FOLD*C_out) block-diagonal conv2 weight (compute_dtype)
    # b2_ref: (1, FOLD*C_out) f32
    # o_ref : (T, FOLD*C_out)          128-lane dense -> unmasked stores
    x = x_ref[...].astype(compute_dtype)
    h = jnp.dot(x, w1_ref[...], preferred_element_type=jnp.float32) + b1_ref[...]
    # sigmoid(z) = 0.5*(tanh(z/2)+1): exact identity, a single EUP transcendental
    # per element, kept in f32 (v5e EUP/VPU have no bf16).
    h = 0.5 * (jnp.tanh(0.5 * h) + 1.0)
    h = h.astype(compute_dtype)
    y = jnp.dot(h, w2_ref[...], preferred_element_type=jnp.float32) + b2_ref[...]
    o_ref[...] = y.astype(o_ref.dtype)


# --------------------------- host-side helpers --------------------------------

def _cdiv(a, b):
    return -(-a // b)


def _round_up(x, m):
    return _cdiv(x, m) * m


def _tpu_generation():
    """Best-effort TPU generation (5/6/7); falls back to 6 if unknown."""
    try:
        kind = (getattr(jax.devices()[0], "device_kind", "") or "").lower()
        for g in (7, 6, 5, 4):
            if f"v{g}" in kind:
                return g
    except Exception:
        pass
    return 6


def _pick_fold(c_in, c_out, generation):
    # fold*c_out is a multiple of 128 -> unmasked 128-lane stores for any c_out.
    fold = 128 // math.gcd(c_out, 128)
    if generation >= 6:
        # v6e/v7x: also fill the MXU K dim / input lanes.  Skip on v5e, where the
        # block-diagonal trick's wasted MACs would erode the ~3x compute/HBM margin.
        while fold * c_in < 128 and fold * max(c_in, c_out) < 512:
            fold *= 2
    return max(fold, 1)


def _choose_tile(e_f, tile_rows, num_tensorcores):
    """Folded-row tile size; generation aware."""
    tile_rows = max(16, (tile_rows // 16) * 16)
    if num_tensorcores >= 2 and e_f > 32:
        # v7x: even number of grid steps so both TensorCores get equal work.
        steps = max(2, 2 * _cdiv(e_f, 2 * tile_rows))
        tile_f = _round_up(_cdiv(e_f, steps), 16)
        return e_f if tile_f >= e_f else tile_f
    # Single TensorCore (v5e/v6e): grid is a serial loop -> biggest tile that fits.
    return e_f if e_f <= tile_rows else tile_rows


def prepare_edge_cnn_weights(w1, b1, w2, b2, *, fold, compute_dtype=jnp.bfloat16):
    """Hoisted, once-per-parameter-set weight prep (block-diagonal + bias tiling).

    w1: (C_out, C_in), b1: (C_out,)   -- Conv1d(kernel_size=1) weights squeezed
    w2: (C_out, C_out), b2: (C_out,)
    """
    eye = jnp.eye(fold, dtype=jnp.float32)
    w1_bd = jnp.kron(eye, w1.T.astype(jnp.float32)).astype(compute_dtype)
    w2_bd = jnp.kron(eye, w2.T.astype(jnp.float32)).astype(compute_dtype)
    b1_t = jnp.tile(b1.astype(jnp.float32), fold)[None, :]
    b2_t = jnp.tile(b2.astype(jnp.float32), fold)[None, :]
    return w1_bd, b1_t, w2_bd, b2_t


# ------------------------------ forward ---------------------------------------

def edge_cnn_forward(edge_attr, prepared_weights, *, fold, c_out,
                     tile_rows=4096, compute_dtype=jnp.bfloat16,
                     out_dtype=None, num_tensorcores=1):
    """EdgeCNN forward for 2-D edge_attr (the `edge_attr.dim() == 2` PyTorch branch).

    edge_attr: (E, C_in); returns (E, C_out) in `out_dtype` (default: edge_attr.dtype).
    """
    if edge_attr is None:       # mirrors the PyTorch `if edge_attr is None` branch
        return None
    # TODO(synk): 3-D (already-batched) edge_attr path of the PyTorch module is not
    # implemented; only the 2-D per-edge case is handled here.
    E, c_in = edge_attr.shape
    out_dtype = edge_attr.dtype if out_dtype is None else out_dtype
    w1_bd, b1_t, w2_bd, b2_t = prepared_weights

    # Minimal padding: only up to a multiple of `fold` (so the fold reshape is a
    # contiguous, metadata-only reshape).  No padding to a tile multiple is needed:
    # the cdiv grid handles a ragged last block (OOB writes are dropped).
    e_pad = _round_up(E, fold)
    x = edge_attr if e_pad == E else jnp.pad(edge_attr, ((0, e_pad - E), (0, 0)))
    e_f = e_pad // fold
    x_folded = x.reshape(e_f, fold * c_in)

    tile_f = _choose_tile(e_f, tile_rows, num_tensorcores)
    grid = (pl.cdiv(e_f, tile_f),)

    kernel = functools.partial(edgecnn_kernel, compute_dtype=compute_dtype)
    out_folded = pl.pallas_call(
        kernel,
        out_shape=jax.ShapeDtypeStruct((e_f, fold * c_out), out_dtype),
        grid_spec=pltpu.PrefetchScalarGridSpec(
            num_scalar_prefetch=0,
            grid=grid,
            in_specs=[
                pl.BlockSpec((tile_f, fold * c_in), lambda i: (i, 0)),        # x tile
                pl.BlockSpec((fold * c_in, fold * c_out), lambda i: (0, 0)),  # W1 (bd)
                pl.BlockSpec((1, fold * c_out), lambda i: (0, 0)),            # b1
                pl.BlockSpec((fold * c_out, fold * c_out), lambda i: (0, 0)), # W2 (bd)
                pl.BlockSpec((1, fold * c_out), lambda i: (0, 0)),            # b2
            ],
            out_specs=pl.BlockSpec((tile_f, fold * c_out), lambda i: (i, 0)),
        ),
        compiler_params=pltpu.CompilerParams(
            dimension_semantics=("parallel",),   # v7x: shards grid steps over 2 TCs
            vmem_limit_bytes=32 * 1024 * 1024,
        ),
    )(x_folded, w1_bd, b1_t, w2_bd, b2_t)

    out = out_folded.reshape(e_pad, c_out)       # metadata-only unfold
    return out if e_pad == E else out[:E]


def edge_cnn_reference(edge_attr, w1, b1, w2, b2):
    h = jax.nn.sigmoid(edge_attr @ w1.T + b1)
    return h @ w2.T + b2


# -------------------------------- demo -----------------------------------------

if __name__ == "__main__":
    key = jax.random.PRNGKey(0)
    k_x, k_w1, k_b1, k_w2, k_b2 = jax.random.split(key, 5)

    E = 300            # deliberately NOT a tile multiple: exercises the ragged path
    in_channels = 16
    out_channels = 32

    edge_attr = jax.random.normal(k_x, (E, in_channels), dtype=jnp.float32)
    bound1 = 1.0 / jnp.sqrt(in_channels)
    bound2 = 1.0 / jnp.sqrt(out_channels)
    w1 = jax.random.uniform(k_w1, (out_channels, in_channels), jnp.float32, -bound1, bound1)
    b1 = jax.random.uniform(k_b1, (out_channels,), jnp.float32, -bound1, bound1)
    w2 = jax.random.uniform(k_w2, (out_channels, out_channels), jnp.float32, -bound2, bound2)
    b2 = jax.random.uniform(k_b2, (out_channels,), jnp.float32, -bound2, bound2)

    ref = edge_cnn_reference(edge_attr, w1, b1, w2, b2)

    gen = _tpu_generation()
    n_tc = 2 if gen >= 7 else 1
    fold = _pick_fold(in_channels, out_channels, gen)

    # 1) f32 compute path: bit-for-bit equivalent math (block-diag zeros add exactly).
    prep_f32 = prepare_edge_cnn_weights(w1, b1, w2, b2, fold=fold,
                                        compute_dtype=jnp.float32)
    out_f32 = edge_cnn_forward(edge_attr, prep_f32, fold=fold, c_out=out_channels,
                               compute_dtype=jnp.float32, out_dtype=jnp.float32,
                               num_tensorcores=n_tc)
    out_f32 = jax.block_until_ready(out_f32)
    assert out_f32.shape == (E, out_channels)
    assert jnp.allclose(out_f32, ref, atol=2e-5, rtol=1e-5), "f32 path mismatch"

    # 2) Default perf path: bf16 compute (f32 accumulation + f32 sigmoid), f32 output.
    prep_bf16 = prepare_edge_cnn_weights(w1, b1, w2, b2, fold=fold,
                                         compute_dtype=jnp.bfloat16)
    out_perf = edge_cnn_forward(edge_attr, prep_bf16, fold=fold, c_out=out_channels,
                                compute_dtype=jnp.bfloat16, out_dtype=jnp.float32,
                                num_tensorcores=n_tc)
    out_perf = jax.block_until_ready(out_perf)
    assert out_perf.shape == (E, out_channels)
    assert jnp.allclose(out_perf, ref, atol=7.5e-2, rtol=5e-2), "bf16-compute mismatch"

    # 3) bf16-output path (halves HBM write traffic; gated behind an accuracy flag).
    out_bf16 = edge_cnn_forward(edge_attr, prep_bf16, fold=fold, c_out=out_channels,
                                compute_dtype=jnp.bfloat16, out_dtype=jnp.bfloat16,
                                num_tensorcores=n_tc)
    out_bf16 = jax.block_until_ready(out_bf16)
    assert out_bf16.shape == (E, out_channels)
    assert jnp.allclose(out_bf16.astype(jnp.float32), ref, atol=1e-1, rtol=5e-2), \
        "bf16-output mismatch"

    print("KERNEL_OK")
</pallas_src>

<mosaic_0001>
module attributes {stable_mosaic.version = 11 : i64} {
  func.func @edgecnn_kernel(%arg0: i32, %arg1: memref<38x128xf32, #tpu.memory_space<vmem>>, %arg2: memref<128x256xf32, #tpu.memory_space<vmem>>, %arg3: memref<1x256xf32, #tpu.memory_space<vmem>>, %arg4: memref<256x256xf32, #tpu.memory_space<vmem>>, %arg5: memref<1x256xf32, #tpu.memory_space<vmem>>, %arg6: memref<38x256xf32, #tpu.memory_space<vmem>>) attributes {dimension_semantics = [#tpu.dimension_semantics<parallel>], iteration_bounds = array<i64: 1>, scalar_prefetch = 0 : i64, scratch_operands = 0 : i64, tpu.core_type = #tpu.core_type<tc>, window_params = [{transform_indices = @transform_0, window_bounds = array<i64: 38, 128>}, {pipeline_mode = #tpu.pipeline_mode<synchronous>, transform_indices = @transform_1, window_bounds = array<i64: 128, 256>}, {pipeline_mode = #tpu.pipeline_mode<synchronous>, transform_indices = @transform_2, window_bounds = array<i64: 1, 256>}, {pipeline_mode = #tpu.pipeline_mode<synchronous>, transform_indices = @transform_3, window_bounds = array<i64: 256, 256>}, {pipeline_mode = #tpu.pipeline_mode<synchronous>, transform_indices = @transform_4, window_bounds = array<i64: 1, 256>}, {transform_indices = @transform_5, window_bounds = array<i64: 38, 256>}]} {
    %c0 = arith.constant 0 : index
    %c0_0 = arith.constant 0 : index
    %0 = vector.load %arg1[%c0, %c0_0] : memref<38x128xf32, #tpu.memory_space<vmem>>, vector<38x128xf32>
    %c0_1 = arith.constant 0 : index
    %c0_2 = arith.constant 0 : index
    %1 = vector.load %arg2[%c0_1, %c0_2] : memref<128x256xf32, #tpu.memory_space<vmem>>, vector<128x256xf32>
    %cst = arith.constant dense<0.000000e+00> : vector<38x256xf32>
    %2 = tpu.matmul %0, %1, %cst {dimension_numbers = #tpu.dot_dimension_numbers<[1], [0], [0], [1], [0, 0, 1, 1], [], []>} : vector<38x128xf32>, vector<128x256xf32>, vector<38x256xf32> -> vector<38x256xf32>
    %c0_3 = arith.constant 0 : index
    %c0_4 = arith.constant 0 : index
    %3 = vector.load %arg3[%c0_3, %c0_4] : memref<1x256xf32, #tpu.memory_space<vmem>>, vector<1x256xf32>
    %4 = vector.broadcast %3 : vector<1x256xf32> to vector<38x256xf32>
    %5 = arith.addf %2, %4 : vector<38x256xf32>
    %cst_5 = arith.constant 5.000000e-01 : f32
    %6 = vector.broadcast %cst_5 : f32 to vector<38x256xf32>
    %7 = arith.mulf %6, %5 : vector<38x256xf32>
    %8 = math.tanh %7 : vector<38x256xf32>
    %cst_6 = arith.constant 1.000000e+00 : f32
    %9 = vector.broadcast %cst_6 : f32 to vector<38x256xf32>
    %10 = arith.addf %8, %9 : vector<38x256xf32>
    %cst_7 = arith.constant 5.000000e-01 : f32
    %11 = vector.broadcast %cst_7 : f32 to vector<38x256xf32>
    %12 = arith.mulf %11, %10 : vector<38x256xf32>
    %c0_8 = arith.constant 0 : index
    %c0_9 = arith.constant 0 : index
    %13 = vector.load %arg4[%c0_8, %c0_9] : memref<256x256xf32, #tpu.memory_space<vmem>>, vector<256x256xf32>
    %cst_10 = arith.constant dense<0.000000e+00> : vector<38x256xf32>
    %14 = tpu.matmul %12, %13, %cst_10 {dimension_numbers = #tpu.dot_dimension_numbers<[1], [0], [0], [1], [0, 0, 1, 1], [], []>} : vector<38x256xf32>, vector<256x256xf32>, vector<38x256xf32> -> vector<38x256xf32>
    %c0_11 = arith.constant 0 : index
    %c0_12 = arith.constant 0 : index
    %15 = vector.load %arg5[%c0_11, %c0_12] : memref<1x256xf32, #tpu.memory_space<vmem>>, vector<1x256xf32>
    %16 = vector.broadcast %15 : vector<1x256xf32> to vector<38x256xf32>
    %17 = arith.addf %14, %16 : vector<38x256xf32>
    %c0_13 = arith.constant 0 : index
    %c0_14 = arith.constant 0 : index
    %18 = vector.load %arg6[%c0_13, %c0_14] : memref<38x256xf32, #tpu.memory_space<vmem>>, vector<38x256xf32>
    tpu.vector_store %arg6[%c0_13, %c0_14], %17 {strides = array<i32>} : memref<38x256xf32, #tpu.memory_space<vmem>>, vector<38x256xf32>,
    return
  }
  func.func @transform_0(%arg0: i32) -> (i32, i32) {
    %c0_i32 = arith.constant 0 : i32
    %c0_i32_0 = arith.constant 0 : i32
    return %arg0, %c0_i32 : i32, i32
  }
  func.func @transform_1(%arg0: i32) -> (i32, i32) {
    %c0_i32 = arith.constant 0 : i32
    %c0_i32_0 = arith.constant 0 : i32
    %c0_i32_1 = arith.constant 0 : i32
    return %c0_i32, %c0_i32_0 : i32, i32
  }
  func.func @transform_2(%arg0: i32) -> (i32, i32) {
    %c0_i32 = arith.constant 0 : i32
    %c0_i32_0 = arith.constant 0 : i32
    %c0_i32_1 = arith.constant 0 : i32
    return %c0_i32, %c0_i32_0 : i32, i32
  }
  func.func @transform_3(%arg0: i32) -> (i32, i32) {
    %c0_i32 = arith.constant 0 : i32
    %c0_i32_0 = arith.constant 0 : i32
    %c0_i32_1 = arith.constant 0 : i32
    return %c0_i32, %c0_i32_0 : i32, i32
  }
  func.func @transform_4(%arg0: i32) -> (i32, i32) {
    %c0_i32 = arith.constant 0 : i32
    %c0_i32_0 = arith.constant 0 : i32
    %c0_i32_1 = arith.constant 0 : i32
    return %c0_i32, %c0_i32_0 : i32, i32
  }
  func.func @transform_5(%arg0: i32) -> (i32, i32) {
    %c0_i32 = arith.constant 0 : i32
    %c0_i32_0 = arith.constant 0 : i32
    return %arg0, %c0_i32 : i32, i32
  }
}

</mosaic_0001>

<bundles_post_ra>
// kernel: tpu_custom_call.1
= control target key start
LH: loop header
LB: loop body
LE: loop exit
PB: predicated region body
PF: predicated region fallthrough
CT: control target
= control target key end

     0   :  { %10 = vsyncpa [#allocation3], 0  ;;  %s643_s0 = inlined_call_operand.hbm [shape: f32[38,128], index: 0, kind: input, shape index: {}]   ;;  %s644_s1 = inlined_call_operand.hbm [shape: f32[128,256], index: 1, kind: input, shape index: {}]   ;;  %s645_s2 = inlined_call_operand.vmem [shape: f32[1,256], index: 2, kind: input, shape index: {}]   ;;  %s646_s3 = inlined_call_operand.hbm [shape: f32[256,256], index: 3, kind: input, shape index: {}]   ;;  %s647_s4 = inlined_call_operand.vmem [shape: f32[1,256], index: 4, kind: input, shape index: {}]   ;;  %s648_s5 = inlined_call_operand.hbm [shape: f32[38,256], index: 5, kind: output, shape index: {}]  }
   0x1   :  { %11 = vsyncpa [#allocation6], 0 }
   0x2   :  { %12 = vsyncpa [#allocation4], 0  ;;  %s560_s18 = smov [#allocation5]  }
   0x3   :  { %s30_s19 = sshll.u32 %s560_s18, 4  ;;  %s31_s19 = int_to_ptr.vmem [resolvable:$true] %s30_s19 }
   0x4   :  { %s482_s20 = scalar_lea.vmem %s31_s19, 4096  ;;  %p487_p1 = scmp.lt.s32.totalorder %s31_s19, %s31_s19 }
   0x5   :  { %p483_p0 = scmp.ne.s32.totalorder %s31_s19, %s482_s20  ;;  %p488_p2 = scmp.lt.s32.totalorder %s482_s20, %s482_s20 }
   0x7   :  { %p489_p3 = por %p488_p2, %p487_p1 }
   0x9   :  { %p490_p4 = pnand %p489_p3, %p483_p0 }
   0xb   :  { %493 = shalt.err (!%p490_p4)
}
   0xc   :  { %s561_s21 = smov 256   ;;  %s562_s22 = smov 16  }
   0xd   :  { %36 = dma.hbm_to_vmem [thread:$0]  %s644_s1, 4096, %s31_s19, [#allocation6], %s561_s21, %s561_s21, %s562_s22  }
   0xe   :  { %s563_s25 = smov [#allocation2]  }
   0xf   :  { %s18_s26 = sshll.u32 %s563_s25, 4  ;;  %s19_s26 = int_to_ptr.vmem [resolvable:$true] %s18_s26 }
  0x10   :  { %s502_s27 = scalar_lea.vmem %s19_s26, 640  ;;  %p507_p6 = scmp.lt.s32.totalorder %s19_s26, %s19_s26 }
  0x11   :  { %p503_p5 = scmp.ne.s32.totalorder %s19_s26, %s502_s27  ;;  %p508_p7 = scmp.lt.s32.totalorder %s502_s27, %s502_s27 }
  0x13   :  { %p509_p8 = por %p508_p7, %p507_p6 }
  0x15   :  { %p510_p9 = pnand %p509_p8, %p503_p5 }
  0x17   :  { %513 = shalt.err (!%p510_p9)
}
  0x18   :  { %s564_s28 = smov 128   ;;  %s565_s29 = smov 8  }
  0x19   :  { %24 = dma.hbm_to_vmem [thread:$0]  %s643_s0, 640, %s19_s26, [#allocation3], %s564_s28, %s564_s28, %s565_s29  }
  0x1a   :  { %s566_s7 = smov [#allocation7]  }
  0x1b   :  { %s44_s8 = sshll.u32 %s566_s7, 4  ;;  %s45_s8 = int_to_ptr.vmem [resolvable:$true] %s44_s8 }
  0x1c   :  { %s522_s1 = scalar_lea.vmem %s45_s8, 8192  ;;  %p527_p11 = scmp.lt.s32.totalorder %s45_s8, %s45_s8 }
  0x1d   :  { %p523_p10 = scmp.ne.s32.totalorder %s45_s8, %s522_s1  ;;  %p528_p12 = scmp.lt.s32.totalorder %s522_s1, %s522_s1 }
  0x1f   :  { %p529_p13 = por %p528_p12, %p527_p11 }
  0x21   :  { %p530_p0 = pnand %p529_p13, %p523_p10 }
  0x23   :  { %533 = shalt.err (!%p530_p0)
}
  0x24   :  { %50 = dma.hbm_to_vmem [thread:$0]  %s646_s3, 8192, %s45_s8, [#allocation6], %s561_s21, %s561_s21, %s562_s22  }
  0x25   :  { %554 = dma.done.wait [#allocation3], 640  }
  0x26   :  { %555 = vsyncadd [#allocation3], 4294966656 }
  0x27   :  { %556 = dma.done.wait [#allocation6], 12288  }
  0x28   :  { %557 = vsyncadd [#allocation6], 4294955008  ;;  %v567_v0 = vmov 0.0   ;;  %v98_v1 = vld [vmem:[#allocation5 + $0xf8] sm:$0xff]  ;;  %v97_v2 = vld [vmem:[#allocation5 + $0xf0] sm:$0xff] }
  0x29   :  { %175 = vmatprep.mubr.f32.mxu0 %v567_v0  ;;  %v96_v3 = vld [vmem:[#allocation5 + $0xe8] sm:$0xff]  ;;  %111 = vmatprep.subr.mxu0 %v98_v1  ;;  %v95_v4 = vld [vmem:[#allocation5 + $0xe0] sm:$0xff]  ;;  %v94_v5 = vld [vmem:[#allocation5 + $0xd8] sm:$0xff] }
  0x2a   :  { %112 = vmatpush1.msra.mxu0 %v97_v2  ;;  %v93_v6 = vld [vmem:[#allocation5 + $0xd0] sm:$0xff]  ;;  %v92_v7 = vld [vmem:[#allocation5 + $0xc8] sm:$0xff]  ;;  %v91_v8 = vld [vmem:[#allocation5 + $0xc0] sm:$0xff] }
  0x2b   :  { %113 = vmatprep.subr.mxu0 %v96_v3  ;;  %v90_v9 = vld [vmem:[#allocation5 + $0xb8] sm:$0xff]  ;;  %v89_v10 = vld [vmem:[#allocation5 + $0xb0] sm:$0xff]  ;;  %v88_v11 = vld [vmem:[#allocation5 + $0xa8] sm:$0xff] }
  0x2c   :  { %114 = vmatpush1.msra.mxu0 %v95_v4  ;;  %v87_v12 = vld [vmem:[#allocation5 + $0xa0] sm:$0xff]  ;;  %v86_v13 = vld [vmem:[#allocation5 + $0x98] sm:$0xff]  ;;  %v85_v14 = vld [vmem:[#allocation5 + $0x90] sm:$0xff] }
  0x2d   :  { %115 = vmatprep.subr.mxu0 %v94_v5  ;;  %v84_v15 = vld [vmem:[#allocation5 + $0x88] sm:$0xff]  ;;  %v277_v16 = vld [vmem:[#allocation7 + $0xf8] sm:$0xff]  ;;  %v276_v17 = vld [vmem:[#allocation7 + $0xf0] sm:$0xff] }
  0x2e   :  { %116 = vmatpush1.msra.mxu0 %v93_v6  ;;  %v83_v18 = vld [vmem:[#allocation5 + $0x80] sm:$0xff]  ;;  %322 = vmatprep.subr.mxu1 %v277_v16  ;;  %v275_v19 = vld [vmem:[#allocation7 + $0xe8] sm:$0xff]  ;;  %v82_v21 = vld [vmem:[#allocation5 + $0x78] sm:$0xff] }
  0x2f   :  { %117 = vmatprep.subr.mxu0 %v92_v7  ;;  %v274_v20 = vld [vmem:[#allocation7 + $0xe0] sm:$0xff]  ;;  %323 = vmatpush1.msra.mxu1 %v276_v17  ;;  %v273_v22 = vld [vmem:[#allocation7 + $0xd8] sm:$0xff]  ;;  %v81_v23 = vld [vmem:[#allocation5 + $0x70] sm:$0xff] }
  0x30   :  { %118 = vmatpush1.msra.mxu0 %v91_v8  ;;  %324 = vmatprep.subr.mxu1 %v275_v19  ;;  %v272_v24 = vld [vmem:[#allocation7 + $0xd0] sm:$0xff]  ;;  %v80_v25 = vld [vmem:[#allocation5 + $0x68] sm:$0xff]  ;;  %v79_v27 = vld [vmem:[#allocation5 + $0x60] sm:$0xff] }
  0x31   :  { %119 = vmatprep.subr.mxu0 %v90_v9  ;;  %325 = vmatpush1.msra.mxu1 %v274_v20  ;;  %v271_v26 = vld [vmem:[#allocation7 + $0xc8] sm:$0xff]  ;;  %v270_v28 = vld [vmem:[#allocation7 + $0xc0] sm:$0xff]  ;;  %v78_v29 = vld [vmem:[#allocation5 + $0x58] sm:$0xff] }
  0x32   :  { %120 = vmatpush1.msra.mxu0 %v89_v10  ;;  %326 = vmatprep.subr.mxu1 %v273_v22  ;;  %v269_v30 = vld [vmem:[#allocation7 + $0xb8] sm:$0xff]  ;;  %v77_v31 = vld [vmem:[#allocation5 + $0x50] sm:$0xff]  ;;  %v76_v33 = vld [vmem:[#allocation5 + $0x48] sm:$0xff] }
  0x33   :  { %121 = vmatprep.subr.mxu0 %v88_v11  ;;  %327 = vmatpush1.msra.mxu1 %v272_v24  ;;  %v268_v32 = vld [vmem:[#allocation7 + $0xb0] sm:$0xff]  ;;  %v267_v34 = vld [vmem:[#allocation7 + $0xa8] sm:$0xff]  ;;  %v75_v35 = vld [vmem:[#allocation5 + $0x40] sm:$0xff] }
  0x34   :  { %122 = vmatpush1.msra.mxu0 %v87_v12  ;;  %328 = vmatprep.subr.mxu1 %v271_v26  ;;  %v266_v36 = vld [vmem:[#allocation7 + $0xa0] sm:$0xff]  ;;  %v74_v37 = vld [vmem:[#allocation5 + $0x38] sm:$0xff]  ;;  %v73_v39 = vld [vmem:[#allocation5 + $0x30] sm:$0xff] }
  0x35   :  { %123 = vmatprep.subr.mxu0 %v86_v13  ;;  %329 = vmatpush1.msra.mxu1 %v270_v28  ;;  %v265_v38 = vld [vmem:[#allocation7 + $0x98] sm:$0xff]  ;;  %v264_v40 = vld [vmem:[#allocation7 + $0x90] sm:$0xff]  ;;  %v72_v41 = vld [vmem:[#allocation5 + $0x28] sm:$0xff] }
  0x36   :  { %124 = vmatpush1.msra.mxu0 %v85_v14  ;;  %330 = vmatprep.subr.mxu1 %v269_v30  ;;  %v263_v42 = vld [vmem:[#allocation7 + $0x88] sm:$0xff]  ;;  %v71_v43 = vld [vmem:[#allocation5 + $0x20] sm:$0xff]  ;;  %v70_v45 = vld [vmem:[#allocation5 + $0x18] sm:$0xff] }
  0x37   :  { %125 = vmatprep.subr.mxu0 %v84_v15  ;;  %331 = vmatpush1.msra.mxu1 %v268_v32  ;;  %v262_v44 = vld [vmem:[#allocation7 + $0x80] sm:$0xff]  ;;  %v261_v46 = vld [vmem:[#allocation7 + $0x78] sm:$0xff]  ;;  %v69_v47 = vld [vmem:[#allocation5 + $0x10] sm:$0xff] }
  0x38   :  { %126 = vmatpush1.msra.mxu0 %v83_v18  ;;  %332 = vmatprep.subr.mxu1 %v267_v34  ;;  %v260_v48 = vld [vmem:[#allocation7 + $0x70] sm:$0xff]  ;;  %v68_v49 = vld [vmem:[#allocation5 + $0x8] sm:$0xff]  ;;  %v67_v51 = vld [vmem:[#allocation5] sm:$0xff] }
  0x39   :  { %127 = vmatprep.subr.mxu0 %v82_v21  ;;  %333 = vmatpush1.msra.mxu1 %v266_v36  ;;  %v259_v50 = vld [vmem:[#allocation7 + $0x68] sm:$0xff]  ;;  %v258_v52 = vld [vmem:[#allocation7 + $0x60] sm:$0xff]  ;;  %v62_v53 = vld [vmem:[#allocation2] sm:$0xff] }
  0x3a   :  { %128 = vmatpush1.msra.mxu0 %v81_v23  ;;  %334 = vmatprep.subr.mxu1 %v265_v38  ;;  %v257_v54 = vld [vmem:[#allocation7 + $0x58] sm:$0xff]  ;;  %v256_v55 = vld [vmem:[#allocation7 + $0x50] sm:$0xff]  ;;  %v255_v56 = vld [vmem:[#allocation7 + $0x48] sm:$0xff]  ;;  %v101_v38 = vlaneseq }
  0x3b   :  { %129 = vmatprep.subr.mxu0 %v80_v25  ;;  %335 = vmatpush1.msra.mxu1 %v264_v40  ;;  %v254_v57 = vld [vmem:[#allocation7 + $0x40] sm:$0xff]  ;;  %v253_v59 = vld [vmem:[#allocation7 + $0x38] sm:$0xff]  ;;  %v252_v60 = vld [vmem:[#allocation7 + $0x30] sm:$0xff] }
  0x3c   :  { %130 = vmatpush1.msra.mxu0 %v79_v27  ;;  %336 = vmatprep.subr.mxu1 %v263_v42  ;;  %v63_v58 = vld [vmem:[#allocation2 + $0x8] sm:$0xff]  ;;  %v251_v61 = vld [vmem:[#allocation7 + $0x28] sm:$0xff]  ;;  %v249_v1 = vld [vmem:[#allocation7 + $0x18] sm:$0xff] }
  0x3d   :  { %131 = vmatprep.subr.mxu0 %v78_v29  ;;  %337 = vmatpush1.msra.mxu1 %v262_v44  ;;  %v250_v62 = vld [vmem:[#allocation7 + $0x20] sm:$0xff]  ;;  %v64_v63 = vld [vmem:[#allocation2 + $0x10] sm:$0xff]  ;;  %v248_v2 = vld [vmem:[#allocation7 + $0x10] sm:$0xff] }
  0x3e   :  { %132 = vmatpush1.msra.mxu0 %v77_v31  ;;  %338 = vmatprep.subr.mxu1 %v261_v46  ;;  %v247_v3 = vld [vmem:[#allocation7 + $0x8] sm:$0xff]  ;;  %v246_v4 = vld [vmem:[#allocation7] sm:$0xff]  ;;  %v65_v5 = vld [vmem:[#allocation2 + $0x18] sm:$0xff] }
  0x3f   :  { %133 = vmatprep.subr.mxu0 %v76_v33  ;;  %339 = vmatpush1.msra.mxu1 %v260_v48  ;;  %v309_v6 = vld [vmem:[#allocation7 + $0x1f8] sm:$0xff]  ;;  %v308_v7 = vld [vmem:[#allocation7 + $0x1f0] sm:$0xff]  ;;  %v307_v8 = vld [vmem:[#allocation7 + $0x1e8] sm:$0xff] }
  0x40   :  { %134 = vmatpush1.msra.mxu0 %v75_v35  ;;  %340 = vmatprep.subr.mxu1 %v259_v50  ;;  %v306_v9 = vld [vmem:[#allocation7 + $0x1e0] sm:$0xff]  ;;  %v66_v10 = vld [vmem:[#allocation2 + $0x20] sm:$0x3f]  ;;  %v304_v12 = vld [vmem:[#allocation7 + $0x1d0] sm:$0xff] }
  0x41   :  { %135 = vmatprep.subr.mxu0 %v74_v37  ;;  %341 = vmatpush1.msra.mxu1 %v258_v52  ;;  %v305_v11 = vld [vmem:[#allocation7 + $0x1d8] sm:$0xff]  ;;  %v303_v13 = vld [vmem:[#allocation7 + $0x1c8] sm:$0xff]  ;;  %v302_v14 = vld [vmem:[#allocation7 + $0x1c0] sm:$0xff] }
  0x42   :  { %136 = vmatpush1.msra.mxu0 %v73_v39  ;;  %342 = vmatprep.subr.mxu1 %v257_v54  ;;  %v301_v15 = vld [vmem:[#allocation7 + $0x1b8] sm:$0xff]  ;;  %v300_v16 = vld [vmem:[#allocation7 + $0x1b0] sm:$0xff]  ;;  %v299_v17 = vld [vmem:[#allocation7 + $0x1a8] sm:$0xff]  ;;  %v619_v39 = vshrl.u32 %v101_v38, 7 }
  0x43   :  { %137 = vmatprep.subr.mxu0 %v72_v41  ;;  %343 = vmatpush1.msra.mxu1 %v256_v55  ;;  %v297_v18 = vld [vmem:[#allocation7 + $0x198] sm:$0xff]  ;;  %v296_v19 = vld [vmem:[#allocation7 + $0x190] sm:$0xff]  ;;  %v295_v20 = vld [vmem:[#allocation7 + $0x188] sm:$0xff] }
  0x44   :  { %138 = vmatpush1.msra.mxu0 %v71_v43  ;;  %344 = vmatprep.subr.mxu1 %v255_v56  ;;  %v294_v21 = vld [vmem:[#allocation7 + $0x180] sm:$0xff]  ;;  %v293_v22 = vld [vmem:[#allocation7 + $0x178] sm:$0xff]  ;;  %v292_v23 = vld [vmem:[#allocation7 + $0x170] sm:$0xff]  ;;  %v103_v40 = vsub.s32 0, %v619_v39  ;;  %v107_v42 = vsub.s32 1, %v619_v39 }
  0x45   :  { %139 = vmatprep.subr.mxu0 %v70_v45  ;;  %345 = vmatpush1.msra.mxu1 %v254_v57  ;;  %v291_v24 = vld [vmem:[#allocation7 + $0x168] sm:$0xff]  ;;  %v290_v25 = vld [vmem:[#allocation7 + $0x160] sm:$0xff]  ;;  %v289_v26 = vld [vmem:[#allocation7 + $0x158] sm:$0xff] }
  0x46   :  { %140 = vmatpush1.msra.mxu0 %v69_v47  ;;  %346 = vmatprep.subr.mxu1 %v253_v59  ;;  %v288_v27 = vld [vmem:[#allocation7 + $0x150] sm:$0xff]  ;;  %v287_v28 = vld [vmem:[#allocation7 + $0x148] sm:$0xff]  ;;  %v286_v29 = vld [vmem:[#allocation7 + $0x140] sm:$0xff] }
  0x47   :  { %141 = vmatprep.subr.mxu0 %v68_v49  ;;  %347 = vmatpush1.msra.mxu1 %v252_v60  ;;  %v285_v30 = vld [vmem:[#allocation7 + $0x138] sm:$0xff]  ;;  %v284_v31 = vld [vmem:[#allocation7 + $0x130] sm:$0xff]  ;;  %v283_v32 = vld [vmem:[#allocation7 + $0x128] sm:$0xff] }
  0x48   :  { %142 = vmatpush1.msra.mxu0 %v67_v51  ;;  %348 = vmatprep.subr.mxu1 %v251_v61  ;;  %v282_v33 = vld [vmem:[#allocation7 + $0x120] sm:$0xff]  ;;  %v281_v34 = vld [vmem:[#allocation7 + $0x118] sm:$0xff]  ;;  %v280_v35 = vld [vmem:[#allocation7 + $0x110] sm:$0xff] }
  0x49   :  { %176 = vmatmul.mubr.f32.vlgmr.msra.gmra.mxu0 %v62_v53  ;;  %349 = vmatpush1.msra.mxu1 %v250_v62  ;;  %v279_v36 = vld [vmem:[#allocation7 + $0x108] sm:$0xff]  ;;  %v278_v37 = vld [vmem:[#allocation7 + $0x100] sm:$0xff]  ;;  %v99_v41 = vld [vmem:[%s645_s2] sm:$0x3] }
  0x4a   :  { %181 = vmatprep.mubr.f32.mxu0 %v567_v0  ;;  %350 = vmatprep.subr.mxu1 %v249_v1  ;;  %v104_v43 = vrot.slane %v99_v41, %v103_v40  ;;  %v108_v44 = vrot.slane %v99_v41, %v107_v42 }
  0x4b   :  { %351 = vmatpush1.msra.mxu1 %v248_v2 }
  0x4c   :  { %352 = vmatprep.subr.mxu1 %v247_v3 }
  0x4d   :  { %182 = vmatmul.mubr.f32.gmra.mxu0 %v63_v58  ;;  %353 = vmatpush1.msra.mxu1 %v246_v4 }
  0x4e   :  { %187 = vmatprep.mubr.f32.mxu0 %v567_v0  ;;  %354 = vmatprep.subr.mxu1 %v309_v6 }
  0x4f   :  { %355 = vmatpush2.msra.mxu1 %v308_v7 }
  0x50   :  { %356 = vmatprep.subr.mxu1 %v307_v8 }
  0x51   :  { %188 = vmatmul.mubr.f32.gmra.mxu0 %v64_v63  ;;  %357 = vmatpush2.msra.mxu1 %v306_v9 }
  0x52   :  { %193 = vmatprep.mubr.f32.mxu0 %v567_v0  ;;  %358 = vmatprep.subr.mxu1 %v305_v11 }
  0x53   :  { %359 = vmatpush2.msra.mxu1 %v304_v12 }
  0x54   :  { %360 = vmatprep.subr.mxu1 %v303_v13 }
  0x55   :  { %194 = vmatmul.mubr.f32.gmra.mxu0 %v65_v5  ;;  %361 = vmatpush2.msra.mxu1 %v302_v14 }
  0x56   :  { %199 = vmatprep.mubr.f32.mxu0 %v567_v0  ;;  %362 = vmatprep.subr.mxu1 %v301_v15  ;;  %v298_v0 = vld [vmem:[#allocation7 + $0x1a0] sm:$0xff] }
  0x57   :  { %363 = vmatpush2.msra.mxu1 %v300_v16 }
  0x58   :  { %364 = vmatprep.subr.mxu1 %v299_v17 }
  0x59   :  { %200 = vmatmul.mubr.f32.gmra.mxu0 %v66_v10  ;;  %365 = vmatpush2.msra.mxu1 %v298_v0 }
  0x5a   :  { %366 = vmatprep.subr.mxu1 %v297_v18 }
  0x5b   :  { %367 = vmatpush2.msra.mxu1 %v296_v19 }
  0x5c   :  { %368 = vmatprep.subr.mxu1 %v295_v20 }
  0x5d   :  { %369 = vmatpush2.msra.mxu1 %v294_v21 }
  0x5e   :  { %370 = vmatprep.subr.mxu1 %v293_v22 }
  0x5f   :  { %371 = vmatpush2.msra.mxu1 %v292_v23 }
  0x60   :  { %372 = vmatprep.subr.mxu1 %v291_v24 }
  0x61   :  { %373 = vmatpush2.msra.mxu1 %v290_v25 }
  0x62   :  { %374 = vmatprep.subr.mxu1 %v289_v26 }
  0x63   :  { %375 = vmatpush2.msra.mxu1 %v288_v27 }
  0x64   :  { %376 = vmatprep.subr.mxu1 %v287_v28 }
  0x65   :  { %377 = vmatpush2.msra.mxu1 %v286_v29 }
  0x66   :  { %378 = vmatprep.subr.mxu1 %v285_v30 }
  0x67   :  { %379 = vmatpush2.msra.mxu1 %v284_v31 }
  0x68   :  { %380 = vmatprep.subr.mxu1 %v283_v32 }
  0x69   :  { %381 = vmatpush2.msra.mxu1 %v282_v33 }
  0x6a   :  { %382 = vmatprep.subr.mxu1 %v281_v34 }
  0x6b   :  { %383 = vmatpush2.msra.mxu1 %v280_v35 }
  0x6c   :  { %384 = vmatprep.subr.mxu1 %v279_v36 }
  0x6d   :  { %385 = vmatpush2.msra.mxu1 %v278_v37 }
 0x109   :  { %v177_v45 = vpop.f32.mrf.mxu0 }
 0x10a   :  { %v178_v46 = vadd.f32 %v177_v45, %v104_v43 }
 0x10b   :  { %v179_v47 = vpop.f32.mrf.mxu0 }
 0x10c   :  { %v206_v48 = vmul.f32 0.5, %v178_v46  ;;  %v180_v49 = vadd.f32 %v179_v47, %v108_v44 }
 0x10d   :  { %v183_v50 = vpop.f32.mrf.mxu0 }
 0x10e   :  { %454 = vtanh.f32 %v206_v48  ;;  %v207_v51 = vmul.f32 0.5, %v180_v49  ;;  %v184_v52 = vadd.f32 %v183_v50, %v104_v43 }
 0x10f   :  { %v185_v53 = vpop.f32.mrf.mxu0 }
 0x110   :  { %456 = vtanh.f32 %v207_v51  ;;  %v208_v54 = vmul.f32 0.5, %v184_v52  ;;  %v186_v55 = vadd.f32 %v185_v53, %v108_v44 }
 0x111   :  { %v189_v56 = vpop.f32.mrf.mxu0 }
 0x112   :  { %458 = vtanh.f32 %v208_v54  ;;  %v209_v57 = vmul.f32 0.5, %v186_v55  ;;  %v190_v58 = vadd.f32 %v189_v56, %v104_v43 }
 0x113   :  { %v191_v59 = vpop.f32.mrf.mxu0 }
 0x114   :  { %460 = vtanh.f32 %v209_v57  ;;  %v210_v60 = vmul.f32 0.5, %v190_v58  ;;  %v192_v61 = vadd.f32 %v191_v59, %v108_v44 }
 0x115   :  { %v195_v62 = vpop.f32.mrf.mxu0 }
 0x116   :  { %462 = vtanh.f32 %v210_v60  ;;  %v211_v63 = vmul.f32 0.5, %v192_v61  ;;  %v196_v1 = vadd.f32 %v195_v62, %v104_v43 }
 0x117   :  { %v197_v2 = vpop.f32.mrf.mxu0 }
 0x118   :  { %464 = vtanh.f32 %v211_v63  ;;  %v212_v3 = vmul.f32 0.5, %v196_v1  ;;  %v198_v4 = vadd.f32 %v197_v2, %v108_v44 }
 0x119   :  { %v201_v5 = vpop.f32.mrf.mxu0 }
 0x11a   :  { %466 = vtanh.f32 %v212_v3  ;;  %v213_v6 = vmul.f32 0.5, %v198_v4  ;;  %v202_v7 = vadd.f32 %v201_v5, %v104_v43 }
 0x11b   :  { %v455_v8 = vpop.eup %454  ;;  %v203_v9 = vpop.f32.mrf.mxu0 }
 0x11c   :  { %468 = vtanh.f32 %v213_v6  ;;  %v214_v10 = vmul.f32 0.5, %v202_v7  ;;  %v204_v11 = vadd.f32 %v203_v9, %v108_v44  ;;  %v226_v13 = vadd.f32 1.0, %v455_v8  ;;  %v310_v44 = vld [vmem:[%s647_s4] sm:$0x3]  ;;  %s568_s4 = smov [#allocation8]  }
 0x11d   :  { %v457_v12 = vpop.eup %456  ;;  %v315_v45 = vrot.slane %v310_v44, %v103_v40  ;;  %v319_v46 = vrot.slane %v310_v44, %v107_v42  ;;  %s432_s12 = sshll.u32 %s568_s4, 4  ;;  %s433_s12 = int_to_ptr.vmem [resolvable:$true] %s432_s12 }
 0x11e   :  { %470 = vtanh.f32 %v214_v10  ;;  %v215_v14 = vmul.f32 0.5, %v204_v11  ;;  %v227_v15 = vadd.f32 1.0, %v457_v12  ;;  %v236_v18 = vmul.f32 0.5, %v226_v13  ;;  %s534_s13 = scalar_lea.vmem %s433_s12, 1280  ;;  %p539_p2 = scmp.lt.s32.totalorder %s433_s12, %s433_s12 }
 0x11f   :  { %v459_v16 = vpop.eup %458  ;;  %p535_p1 = scmp.ne.s32.totalorder %s433_s12, %s534_s13  ;;  %p540_p3 = scmp.lt.s32.totalorder %s534_s13, %s534_s13 }
 0x120   :  { %472 = vtanh.f32 %v215_v14  ;;  %v237_v17 = vmul.f32 0.5, %v227_v15  ;;  %v228_v19 = vadd.f32 1.0, %v459_v16 }
 0x121   :  { %v461_v0 = vpop.eup %460  ;;  %p541_p4 = por %p540_p3, %p539_p2 }
 0x122   :  { %386 = vmatprep.mubr.f32.mxu1 %v237_v17  ;;  %v229_v20 = vadd.f32 1.0, %v461_v0  ;;  %v238_v24 = vmul.f32 0.5, %v228_v19 }
 0x123   :  { %v463_v21 = vpop.eup %462  ;;  %387 = vmatmul.mubr.f32.vlgmr.msra.gmra.mxu1 %v236_v18  ;;  %p542_p5 = pnand %p541_p4, %p535_p1 }
 0x124   :  { %v239_v22 = vmul.f32 0.5, %v229_v20  ;;  %v230_v25 = vadd.f32 1.0, %v463_v21 }
 0x125   :  { %v465_v23 = vpop.eup %464 }
 0x126   :  { %392 = vmatprep.mubr.f32.mxu1 %v239_v22  ;;  %v231_v26 = vadd.f32 1.0, %v465_v23  ;;  %v240_v30 = vmul.f32 0.5, %v230_v25 }
 0x127   :  { %v467_v27 = vpop.eup %466  ;;  %393 = vmatmul.mubr.f32.gmra.mxu1 %v238_v24 }
 0x128   :  { %v241_v28 = vmul.f32 0.5, %v231_v26  ;;  %v232_v31 = vadd.f32 1.0, %v467_v27 }
 0x129   :  { %v469_v29 = vpop.eup %468 }
 0x12a   :  { %398 = vmatprep.mubr.f32.mxu1 %v241_v28  ;;  %v233_v32 = vadd.f32 1.0, %v469_v29  ;;  %v242_v36 = vmul.f32 0.5, %v232_v31 }
 0x12b   :  { %v471_v33 = vpop.eup %470  ;;  %399 = vmatmul.mubr.f32.gmra.mxu1 %v240_v30 }
 0x12c   :  { %v243_v34 = vmul.f32 0.5, %v233_v32  ;;  %v234_v37 = vadd.f32 1.0, %v471_v33 }
 0x12d   :  { %v473_v35 = vpop.eup %472 }
 0x12e   :  { %404 = vmatprep.mubr.f32.mxu1 %v243_v34  ;;  %v235_v38 = vadd.f32 1.0, %v473_v35  ;;  %v244_v43 = vmul.f32 0.5, %v234_v37 }
 0x12f   :  { %405 = vmatmul.mubr.f32.gmra.mxu1 %v242_v36 }
 0x130   :  { %v245_v41 = vmul.f32 0.5, %v235_v38 }
 0x132   :  { %410 = vmatprep.mubr.f32.mxu1 %v245_v41 }
 0x133   :  { %411 = vmatmul.mubr.f32.gmra.mxu1 %v244_v43 }
 0x1e3   :  { %v388_v47 = vpop.f32.mrf.mxu1 }
 0x1e4   :  { %v389_v48 = vadd.f32 %v388_v47, %v315_v45 }
 0x1e5   :  { %v390_v49 = vpop.f32.mrf.mxu1 }
 0x1e6   :  { %417 = vst [vmem:[#allocation8] sm:$0xff] %v389_v48  ;;  %v391_v50 = vadd.f32 %v390_v49, %v319_v46 }
 0x1e7   :  { %v394_v51 = vpop.f32.mrf.mxu1 }
 0x1e8   :  { %418 = vst [vmem:[#allocation8 + $0x8] sm:$0xff] %v391_v50  ;;  %v395_v52 = vadd.f32 %v394_v51, %v315_v45 }
 0x1e9   :  { %v396_v53 = vpop.f32.mrf.mxu1 }
 0x1ea   :  { %419 = vst [vmem:[#allocation8 + $0x10] sm:$0xff] %v395_v52  ;;  %v397_v54 = vadd.f32 %v396_v53, %v319_v46 }
 0x1eb   :  { %v400_v55 = vpop.f32.mrf.mxu1 }
 0x1ec   :  { %420 = vst [vmem:[#allocation8 + $0x18] sm:$0xff] %v397_v54  ;;  %v401_v56 = vadd.f32 %v400_v55, %v315_v45 }
 0x1ed   :  { %v402_v57 = vpop.f32.mrf.mxu1 }
 0x1ee   :  { %421 = vst [vmem:[#allocation8 + $0x20] sm:$0xff] %v401_v56  ;;  %v403_v40 = vadd.f32 %v402_v57, %v319_v46 }
 0x1ef   :  { %v406_v58 = vpop.f32.mrf.mxu1 }
 0x1f0   :  { %422 = vst [vmem:[#allocation8 + $0x28] sm:$0xff] %v403_v40  ;;  %v407_v39 = vadd.f32 %v406_v58, %v315_v45 }
 0x1f1   :  { %v408_v42 = vpop.f32.mrf.mxu1 }
 0x1f2   :  { %423 = vst [vmem:[#allocation8 + $0x30] sm:$0xff] %v407_v39  ;;  %v409_v59 = vadd.f32 %v408_v42, %v319_v46 }
 0x1f3   :  { %v412_v60 = vpop.f32.mrf.mxu1 }
 0x1f4   :  { %424 = vst [vmem:[#allocation8 + $0x38] sm:$0xff] %v409_v59  ;;  %v413_v61 = vadd.f32 %v412_v60, %v315_v45 }
 0x1f5   :  { %v414_v62 = vpop.f32.mrf.mxu1 }
 0x1f6   :  { %425 = vst [vmem:[#allocation8 + $0x40] sm:$0x3f] %v413_v61  ;;  %v415_v63 = vadd.f32 %v414_v62, %v319_v46 }
 0x1f8   :  { %426 = vst [vmem:[#allocation8 + $0x48] sm:$0x3f] %v415_v63 }
 0x1f9   :  { %545 = shalt.err (!%p542_p5)
}
 0x1fa   :  { %438 = dma.vmem_to_hbm [thread:$0]  %s433_s12, 1280, %s648_s5, [#allocation4], %s561_s21, %s561_s21, %s562_s22  }
 0x1fb   :  { %558 = dma.done.wait [#allocation4], 1280  }
 0x1fc   :  { %559 = vsyncadd [#allocation4], 4294966016 }
 0x1fd   :  { %442 = vsyncpa [#allocation3], 1 }
 0x1fe   :  { %443 = vsyncpa [#allocation6], 1 }
 0x1ff   :  { %444 = vsyncpa [#allocation4], 1 }

</bundles_post_ra>
